<compile_context>
chip_gen: v7x
topology: tpu7x:2x2x1
jax: 0.10.0
libtpu: 0.0.40
codegen_flags: <defaults>
</compile_context>

<pallas_src>
import functools

import jax
import jax.numpy as jnp
from jax.experimental import pallas as pl
from jax.experimental.pallas import tpu as pltpu


# ---------------------------------------------------------------------------
# Tiling helpers
# ---------------------------------------------------------------------------
def _pick_tile(n, cap, multiple):
    """Largest t <= cap with t % multiple == 0 and n % t == 0; else n (full dim)."""
    if n <= cap:
        return n
    t = (cap // multiple) * multiple
    while t >= multiple:
        if n % t == 0:
            return t
        t -= multiple
    return n


def _vmem_limit(*nbytes):
    """Scoped-VMEM request derived from tile footprints, v7x-safe cap."""
    total = int(sum(nbytes))
    return int(min(max(2 * total + (4 << 20), 16 << 20), 48 << 20))


# ---------------------------------------------------------------------------
# Projection kernel: y_i = x @ w_i + b_i  for i in range(n_out)
# Fully tiled: grid = (rows, d_out tiles, d_in tiles);  the activation tile is
# shared by all n_out weights (fused QKV path reads x from HBM once per tile).
# ---------------------------------------------------------------------------
def _proj_kernel(x_ref, *rest, n_out):
    w_refs = rest[0:n_out]
    b_refs = rest[n_out:2 * n_out]
    y_refs = rest[2 * n_out:3 * n_out]
    acc_refs = rest[3 * n_out:4 * n_out]

    kk = pl.program_id(2)

    @pl.when(kk == 0)
    def _init():
        for acc in acc_refs:
            acc[...] = jnp.zeros_like(acc)

    x = x_ref[...].astype(jnp.bfloat16)          # bf16 MXU operand, f32 accum
    for w_ref, acc in zip(w_refs, acc_refs):
        acc[...] += jnp.dot(x, w_ref[...], preferred_element_type=jnp.float32)

    @pl.when(kk == pl.num_programs(2) - 1)
    def _store():
        for acc, b_ref, y_ref in zip(acc_refs, b_refs, y_refs):
            y_ref[...] = (acc[...] + b_ref[...].astype(jnp.float32)).astype(y_ref.dtype)


def _projection(x2d, w_ts, bs, *, tm_cap=512, tn_cap=512, tk_cap=512):
    """x2d: (N, d_in) f32.  w_ts: tuple of (d_in, d_out) bf16.  bs: (1, d_out) f32."""
    n_out = len(w_ts)
    n_rows, d_in = x2d.shape
    d_out = w_ts[0].shape[1]

    tm = _pick_tile(n_rows, tm_cap, 8)
    tn = _pick_tile(d_out, tn_cap, 128)
    tkk = _pick_tile(d_in, tk_cap, 128)
    grid = (n_rows // tm, d_out // tn, d_in // tkk)

    x_spec = pl.BlockSpec((tm, tkk), lambda i, j, k: (i, k))
    w_spec = pl.BlockSpec((tkk, tn), lambda i, j, k: (k, j))
    b_spec = pl.BlockSpec((1, tn), lambda i, j, k: (0, j))
    y_spec = pl.BlockSpec((tm, tn), lambda i, j, k: (i, j))

    itemsize = x2d.dtype.itemsize
    vmem = _vmem_limit(
        2 * tm * tkk * itemsize,              # x, double-buffered
        n_out * 2 * tkk * tn * 2,             # bf16 weights, double-buffered
        n_out * 2 * tn * 4,                   # biases
        n_out * 2 * tm * tn * itemsize,       # outputs, double-buffered
        n_out * tm * tn * 4,                  # f32 accumulators
    )

    kernel = functools.partial(_proj_kernel, n_out=n_out)
    out_sd = jax.ShapeDtypeStruct((n_rows, d_out), x2d.dtype)

    outs = pl.pallas_call(
        kernel,
        out_shape=tuple(out_sd for _ in range(n_out)),
        grid=grid,
        in_specs=[x_spec] + [w_spec] * n_out + [b_spec] * n_out,
        out_specs=tuple(y_spec for _ in range(n_out)),
        scratch_shapes=[pltpu.VMEM((tm, tn), jnp.float32) for _ in range(n_out)],
        compiler_params=pltpu.CompilerParams(
            dimension_semantics=("parallel", "parallel", "arbitrary"),
            vmem_limit_bytes=vmem),
    )(x2d, *w_ts, *bs)
    return outs


# ---------------------------------------------------------------------------
# LSH attention kernel: flash-style online softmax over Lk tiles.
# grid = (B, Lq tiles, Lk tiles); last axis "arbitrary" (accumulator axis).
# ---------------------------------------------------------------------------
def _lsh_attn_kernel(q_ref, k_ref, v_ref, hq_ref, hk_ref, o_ref,
                     q_hm, hq_hm, m_sc, l_sc, acc_sc, *, num_heads, d_k, scale):
    ki = pl.program_id(2)
    h, dk = num_heads, d_k
    tq = q_ref.shape[1]
    tk = k_ref.shape[1]

    @pl.when(ki == 0)
    def _init():
        # Scaled, head-major, bf16 q — computed once per (batch, q-tile).
        q = q_ref[0].astype(jnp.float32) * scale              # (tq, D)
        q = jnp.transpose(q.reshape(tq, h, dk), (1, 0, 2))    # (H, tq, dk)
        q_hm[...] = q.astype(jnp.bfloat16)
        # q-side hash codes relayouted once (sublane-major) per q-tile.
        hq_hm[...] = hq_ref[0][:, :, None]                    # (H, tq, 1) int32
        m_sc[...] = jnp.full_like(m_sc, -jnp.inf)
        l_sc[...] = jnp.zeros_like(l_sc)
        acc_sc[...] = jnp.zeros_like(acc_sc)

    # Head-major bf16 K / V for this key tile.
    k_hm = jnp.transpose(k_ref[0].astype(jnp.float32).reshape(tk, h, dk),
                         (1, 0, 2)).astype(jnp.bfloat16)      # (H, tk, dk)
    v_hm = jnp.transpose(v_ref[0].astype(jnp.float32).reshape(tk, h, dk),
                         (1, 0, 2)).astype(jnp.bfloat16)      # (H, tk, dk)

    # (H, tq, tk) scores on the MXU (bf16 operands, f32 accumulation).
    scores = jnp.einsum("hqd,hkd->hqk", q_hm[...], k_hm,
                        preferred_element_type=jnp.float32)

    # LSH bucket mask, fused as a single select (no (H,tq,tk) constant temp).
    neq = hq_hm[...] != hk_ref[0][:, None, :]                 # (H, tq, tk)
    scores = jnp.where(neq, scores - 1e9, scores)

    # Online softmax update (all statistics in f32).
    m_prev = m_sc[...]
    m_new = jnp.maximum(m_prev, jnp.max(scores, axis=-1, keepdims=True))
    alpha = jnp.exp(m_prev - m_new)
    p = jnp.exp(scores - m_new)
    l_sc[...] = alpha * l_sc[...] + jnp.sum(p, axis=-1, keepdims=True)
    acc_sc[...] = alpha * acc_sc[...] + jnp.einsum(
        "hqk,hkd->hqd", p.astype(jnp.bfloat16), v_hm,
        preferred_element_type=jnp.float32)
    m_sc[...] = m_new

    @pl.when(ki == pl.num_programs(2) - 1)
    def _store():
        # Deferred normalization: one (H,tq,dk) multiply instead of (H,tq,tk).
        out = acc_sc[...] * pl.reciprocal(l_sc[...], approx=True)
        out = jnp.transpose(out, (1, 0, 2)).reshape(tq, h * dk)   # lane-dense
        o_ref[0] = out.astype(o_ref.dtype)


def _lsh_attention(q, k, v, hash_q, hash_k, num_heads, d_k, *,
                   tq_cap=256, tk_cap=512):
    b, lq, d = q.shape
    _, lk, _ = k.shape
    h = num_heads
    scale = 1.0 / (d_k ** 0.5)

    # hash-code BlockSpecs put seq in lanes -> tiles must be 128-multiples or full.
    tq = _pick_tile(lq, tq_cap, 128)
    tk = _pick_tile(lk, tk_cap, 128)
    grid = (b, lq // tq, lk // tk)

    vmem = _vmem_limit(
        2 * tq * d * 4,            # q tile (double-buffered)
        2 * 2 * tk * d * 4,        # k, v tiles
        2 * tq * d * 4,            # out tile
        2 * h * (tq + tk) * 4,     # hash codes
        h * tq * d_k * (2 + 4),    # q_hm (bf16) + acc (f32) scratch
        3 * h * tq * 128 * 4,      # m, l, hq scratch (lane-padded)
        2 * h * tq * tk * 4,       # scores / p temporaries
    )

    kernel = functools.partial(_lsh_attn_kernel, num_heads=h, d_k=d_k, scale=scale)
    return pl.pallas_call(
        kernel,
        out_shape=jax.ShapeDtypeStruct((b, lq, d), q.dtype),
        grid=grid,
        in_specs=[
            pl.BlockSpec((1, tq, d), lambda bi, qi, ki: (bi, qi, 0)),
            pl.BlockSpec((1, tk, d), lambda bi, qi, ki: (bi, ki, 0)),
            pl.BlockSpec((1, tk, d), lambda bi, qi, ki: (bi, ki, 0)),
            pl.BlockSpec((1, h, tq), lambda bi, qi, ki: (bi, 0, qi)),
            pl.BlockSpec((1, h, tk), lambda bi, qi, ki: (bi, 0, ki)),
        ],
        out_specs=pl.BlockSpec((1, tq, d), lambda bi, qi, ki: (bi, qi, 0)),
        scratch_shapes=[
            pltpu.VMEM((h, tq, d_k), jnp.bfloat16),   # q head-major, scaled
            pltpu.VMEM((h, tq, 1), jnp.int32),        # hq codes, relayouted once
            pltpu.VMEM((h, tq, 1), jnp.float32),      # m (running max)
            pltpu.VMEM((h, tq, 1), jnp.float32),      # l (running sum)
            pltpu.VMEM((h, tq, d_k), jnp.float32),    # acc (un-normalized p@v)
        ],
        compiler_params=pltpu.CompilerParams(
            dimension_semantics=("parallel", "parallel", "arbitrary"),
            vmem_limit_bytes=vmem),
    )(q, k, v, hash_q, hash_k)


# ---------------------------------------------------------------------------
# Module wrapper
# ---------------------------------------------------------------------------
class LSHSelfAttentionPallas:
    def __init__(self, d_model, num_heads, num_hash_functions=4, *, key,
                 attn_tq_cap=256, attn_tk_cap=512):
        assert d_model % num_heads == 0
        self.d_model = d_model
        self.num_heads = num_heads
        self.d_k = d_model // num_heads
        self.d_v = d_model // num_heads
        self.num_hash_functions = num_hash_functions  # unused in forward (matches torch)
        self.attn_tq_cap = attn_tq_cap
        self.attn_tk_cap = attn_tk_cap

        ks = jax.random.split(key, 6)
        bound = 1.0 / (d_model ** 0.5)

        def lin(kw, kb):
            w = jax.random.uniform(kw, (d_model, d_model), jnp.float32, -bound, bound)
            b = jax.random.uniform(kb, (d_model,), jnp.float32, -bound, bound)
            return w, b

        self.wq, self.bq = lin(ks[0], ks[1])
        self.wk, self.bk = lin(ks[2], ks[3])
        self.wv, self.bv = lin(ks[4], ks[5])

        # Pre-transposed (d_in, d_out) bf16 weights for the MXU; f32 biases.
        self.wq_t = jnp.asarray(self.wq.T, jnp.bfloat16)
        self.wk_t = jnp.asarray(self.wk.T, jnp.bfloat16)
        self.wv_t = jnp.asarray(self.wv.T, jnp.bfloat16)
        self.bq2d = self.bq.reshape(1, -1)
        self.bk2d = self.bk.reshape(1, -1)
        self.bv2d = self.bv.reshape(1, -1)

    def make_hash_codes(self, rng, batch, query_len, key_len):
        # torch draws fresh randint(0, 2) codes each forward; randomness is
        # explicit here so the kernel and the reference share the same codes.
        rq, rk = jax.random.split(rng)
        hq = jax.random.randint(rq, (batch, self.num_heads, query_len), 0, 2, jnp.int32)
        hk = jax.random.randint(rk, (batch, self.num_heads, key_len), 0, 2, jnp.int32)
        return hq, hk

    def __call__(self, query, key, value, hash_codes_q=None, hash_codes_k=None,
                 *, rng=None):
        B, Lq, D = query.shape
        _, Lk, _ = key.shape
        if hash_codes_q is None or hash_codes_k is None:
            rng = jax.random.PRNGKey(0) if rng is None else rng
            hash_codes_q, hash_codes_k = self.make_hash_codes(rng, B, Lq, Lk)

        if (query is key) and (key is value):
            # True self-attention: one fused projection (x read from HBM once
            # per tile, shared across the three weights).
            q2d, k2d, v2d = _projection(
                query.reshape(B * Lq, D),
                (self.wq_t, self.wk_t, self.wv_t),
                (self.bq2d, self.bk2d, self.bv2d))
        else:
            (q2d,) = _projection(query.reshape(B * Lq, D), (self.wq_t,), (self.bq2d,))
            (k2d,) = _projection(key.reshape(B * Lk, D), (self.wk_t,), (self.bk2d,))
            (v2d,) = _projection(value.reshape(B * Lk, D), (self.wv_t,), (self.bv2d,))

        q = q2d.reshape(B, Lq, D)
        k = k2d.reshape(B, Lk, D)
        v = v2d.reshape(B, Lk, D)

        return _lsh_attention(q, k, v, hash_codes_q, hash_codes_k,
                              self.num_heads, self.d_k,
                              tq_cap=self.attn_tq_cap, tk_cap=self.attn_tk_cap)

    # Pure-JAX f32 reference for validation (same hash codes).
    def reference(self, query, key, value, hash_q, hash_k):
        B, Lq, D = query.shape
        _, Lk, _ = key.shape
        H, dk, dv = self.num_heads, self.d_k, self.d_v
        q = (query @ self.wq.T + self.bq).reshape(B, Lq, H, dk).transpose(0, 2, 1, 3)
        k = (key @ self.wk.T + self.bk).reshape(B, Lk, H, dk).transpose(0, 2, 1, 3)
        v = (value @ self.wv.T + self.bv).reshape(B, Lk, H, dv).transpose(0, 2, 1, 3)
        scores = jnp.einsum("bhqd,bhkd->bhqk", q, k) / (dk ** 0.5)
        mask = (hash_q[:, :, :, None] != hash_k[:, :, None, :]).astype(jnp.float32)
        scores = scores + mask * -1e9
        attn = jax.nn.softmax(scores, axis=-1)
        out = jnp.einsum("bhqk,bhkd->bhqd", attn, v)
        return out.transpose(0, 2, 1, 3).reshape(B, Lq, H * dv)


if __name__ == "__main__":
    root = jax.random.PRNGKey(0)
    (k_mod, k_x, k_q, k_k, k_v, k_h1, k_h2,
     k_mod2, k_x2, k_h3) = jax.random.split(root, 10)

    # Tolerances account for bf16 MXU operands (f32 accumulation / statistics).
    TOL = dict(atol=2e-2, rtol=2e-2)

    # --- Small test 1: true self-attention (fused QKV projection path) -----
    B, L, d_model, num_heads = 2, 8, 32, 4
    module = LSHSelfAttentionPallas(d_model, num_heads, num_hash_functions=4,
                                    key=k_mod)
    x = jax.random.normal(k_x, (B, L, d_model), jnp.float32)
    hq1, hk1 = module.make_hash_codes(k_h1, B, L, L)
    out1 = jax.block_until_ready(module(x, x, x, hq1, hk1))
    ref1 = module.reference(x, x, x, hq1, hk1)
    assert out1.shape == (B, L, d_model)
    assert jnp.allclose(out1, ref1, **TOL), "self-attn mismatch"

    # --- Small test 2: distinct q/k/v tensors (per-input projections) ------
    query = jax.random.normal(k_q, (B, L, d_model), jnp.float32)
    key_in = jax.random.normal(k_k, (B, L, d_model), jnp.float32)
    value = jax.random.normal(k_v, (B, L, d_model), jnp.float32)
    hq2, hk2 = module.make_hash_codes(k_h2, B, L, L)
    out2 = jax.block_until_ready(module(query, key_in, value, hq2, hk2))
    ref2 = module.reference(query, key_in, value, hq2, hk2)
    assert out2.shape == (B, L, d_model)
    assert jnp.allclose(out2, ref2, **TOL), "cross-attn mismatch"

    # --- Medium test: exercises flash Lk tiling + multiple q tiles ---------
    B2, L2, d2, h2 = 2, 256, 64, 4
    module2 = LSHSelfAttentionPallas(d2, h2, key=k_mod2,
                                     attn_tq_cap=128, attn_tk_cap=128)
    x2 = jax.random.normal(k_x2, (B2, L2, d2), jnp.float32)
    hq3, hk3 = module2.make_hash_codes(k_h3, B2, L2, L2)
    out3 = jax.block_until_ready(module2(x2, x2, x2, hq3, hk3))
    ref3 = module2.reference(x2, x2, x2, hq3, hk3)
    assert out3.shape == (B2, L2, d2)
    assert jnp.allclose(out3, ref3, **TOL), "flash-tiled attn mismatch"

    print("KERNEL_OK")
</pallas_src>

<mosaic_0001>
module attributes {stable_mosaic.version = 11 : i64} {
  func.func @_proj_kernel(%arg0: i32, %arg1: i32, %arg2: i32, %arg3: memref<16x32xf32, #tpu.memory_space<vmem>>, %arg4: memref<32x32xbf16, #tpu.memory_space<vmem>>, %arg5: memref<32x32xbf16, #tpu.memory_space<vmem>>, %arg6: memref<32x32xbf16, #tpu.memory_space<vmem>>, %arg7: memref<1x32xf32, #tpu.memory_space<vmem>>, %arg8: memref<1x32xf32, #tpu.memory_space<vmem>>, %arg9: memref<1x32xf32, #tpu.memory_space<vmem>>, %arg10: memref<16x32xf32, #tpu.memory_space<vmem>>, %arg11: memref<16x32xf32, #tpu.memory_space<vmem>>, %arg12: memref<16x32xf32, #tpu.memory_space<vmem>>, %arg13: memref<16x32xf32, #tpu.memory_space<vmem>>, %arg14: memref<16x32xf32, #tpu.memory_space<vmem>>, %arg15: memref<16x32xf32, #tpu.memory_space<vmem>>) attributes {dimension_semantics = [#tpu.dimension_semantics<parallel>, #tpu.dimension_semantics<parallel>, #tpu.dimension_semantics<arbitrary>], iteration_bounds = array<i64: 1, 1, 1>, scalar_prefetch = 0 : i64, scratch_operands = 3 : i64, tpu.core_type = #tpu.core_type<tc>, window_params = [{transform_indices = @transform_0, window_bounds = array<i64: 16, 32>}, {transform_indices = @transform_1, window_bounds = array<i64: 32, 32>}, {transform_indices = @transform_2, window_bounds = array<i64: 32, 32>}, {transform_indices = @transform_3, window_bounds = array<i64: 32, 32>}, {transform_indices = @transform_4, window_bounds = array<i64: 1, 32>}, {transform_indices = @transform_5, window_bounds = array<i64: 1, 32>}, {transform_indices = @transform_6, window_bounds = array<i64: 1, 32>}, {transform_indices = @transform_7, window_bounds = array<i64: 16, 32>}, {transform_indices = @transform_8, window_bounds = array<i64: 16, 32>}, {transform_indices = @transform_9, window_bounds = array<i64: 16, 32>}]} {
    %c0_i32 = arith.constant 0 : i32
    %0 = arith.cmpi eq, %arg2, %c0_i32 : i32
    %1 = arith.extui %0 : i1 to i32
    %c0_i32_0 = arith.constant 0 : i32
    %2 = arith.cmpi ne, %1, %c0_i32_0 : i32
    scf.if %2 {
      %cst_24 = arith.constant 0.000000e+00 : f32
      %23 = vector.broadcast %cst_24 : f32 to vector<16x32xf32>
      %c0_25 = arith.constant 0 : index
      %c0_26 = arith.constant 0 : index
      %24 = vector.load %arg13[%c0_25, %c0_26] : memref<16x32xf32, #tpu.memory_space<vmem>>, vector<16x32xf32>
      tpu.vector_store %arg13[%c0_25, %c0_26], %23 {strides = array<i32>} : memref<16x32xf32, #tpu.memory_space<vmem>>, vector<16x32xf32>,
      %cst_27 = arith.constant 0.000000e+00 : f32
      %25 = vector.broadcast %cst_27 : f32 to vector<16x32xf32>
      %c0_28 = arith.constant 0 : index
      %c0_29 = arith.constant 0 : index
      %26 = vector.load %arg14[%c0_28, %c0_29] : memref<16x32xf32, #tpu.memory_space<vmem>>, vector<16x32xf32>
      tpu.vector_store %arg14[%c0_28, %c0_29], %25 {strides = array<i32>} : memref<16x32xf32, #tpu.memory_space<vmem>>, vector<16x32xf32>,
      %cst_30 = arith.constant 0.000000e+00 : f32
      %27 = vector.broadcast %cst_30 : f32 to vector<16x32xf32>
      %c0_31 = arith.constant 0 : index
      %c0_32 = arith.constant 0 : index
      %28 = vector.load %arg15[%c0_31, %c0_32] : memref<16x32xf32, #tpu.memory_space<vmem>>, vector<16x32xf32>
      tpu.vector_store %arg15[%c0_31, %c0_32], %27 {strides = array<i32>} : memref<16x32xf32, #tpu.memory_space<vmem>>, vector<16x32xf32>,
    } else {
    }
    %c0 = arith.constant 0 : index
    %c0_1 = arith.constant 0 : index
    %3 = vector.load %arg3[%c0, %c0_1] : memref<16x32xf32, #tpu.memory_space<vmem>>, vector<16x32xf32>
    %4 = arith.truncf %3 : vector<16x32xf32> to vector<16x32xbf16>
    %c0_2 = arith.constant 0 : index
    %c0_3 = arith.constant 0 : index
    %5 = vector.load %arg13[%c0_2, %c0_3] : memref<16x32xf32, #tpu.memory_space<vmem>>, vector<16x32xf32>
    %c0_4 = arith.constant 0 : index
    %c0_5 = arith.constant 0 : index
    %6 = vector.load %arg4[%c0_4, %c0_5] : memref<32x32xbf16, #tpu.memory_space<vmem>>, vector<32x32xbf16>
    %cst = arith.constant dense<0.000000e+00> : vector<16x32xf32>
    %7 = tpu.matmul %4, %6, %cst {dimension_numbers = #tpu.dot_dimension_numbers<[1], [0], [0], [1], [0, 0, 1, 1], [], []>} : vector<16x32xbf16>, vector<32x32xbf16>, vector<16x32xf32> -> vector<16x32xf32>
    %8 = arith.addf %5, %7 : vector<16x32xf32>
    %c0_6 = arith.constant 0 : index
    %c0_7 = arith.constant 0 : index
    %9 = vector.load %arg13[%c0_6, %c0_7] : memref<16x32xf32, #tpu.memory_space<vmem>>, vector<16x32xf32>
    tpu.vector_store %arg13[%c0_6, %c0_7], %8 {strides = array<i32>} : memref<16x32xf32, #tpu.memory_space<vmem>>, vector<16x32xf32>,
    %c0_8 = arith.constant 0 : index
    %c0_9 = arith.constant 0 : index
    %10 = vector.load %arg14[%c0_8, %c0_9] : memref<16x32xf32, #tpu.memory_space<vmem>>, vector<16x32xf32>
    %c0_10 = arith.constant 0 : index
    %c0_11 = arith.constant 0 : index
    %11 = vector.load %arg5[%c0_10, %c0_11] : memref<32x32xbf16, #tpu.memory_space<vmem>>, vector<32x32xbf16>
    %cst_12 = arith.constant dense<0.000000e+00> : vector<16x32xf32>
    %12 = tpu.matmul %4, %11, %cst_12 {dimension_numbers = #tpu.dot_dimension_numbers<[1], [0], [0], [1], [0, 0, 1, 1], [], []>} : vector<16x32xbf16>, vector<32x32xbf16>, vector<16x32xf32> -> vector<16x32xf32>
    %13 = arith.addf %10, %12 : vector<16x32xf32>
    %c0_13 = arith.constant 0 : index
    %c0_14 = arith.constant 0 : index
    %14 = vector.load %arg14[%c0_13, %c0_14] : memref<16x32xf32, #tpu.memory_space<vmem>>, vector<16x32xf32>
    tpu.vector_store %arg14[%c0_13, %c0_14], %13 {strides = array<i32>} : memref<16x32xf32, #tpu.memory_space<vmem>>, vector<16x32xf32>,
    %c0_15 = arith.constant 0 : index
    %c0_16 = arith.constant 0 : index
    %15 = vector.load %arg15[%c0_15, %c0_16] : memref<16x32xf32, #tpu.memory_space<vmem>>, vector<16x32xf32>
    %c0_17 = arith.constant 0 : index
    %c0_18 = arith.constant 0 : index
    %16 = vector.load %arg6[%c0_17, %c0_18] : memref<32x32xbf16, #tpu.memory_space<vmem>>, vector<32x32xbf16>
    %cst_19 = arith.constant dense<0.000000e+00> : vector<16x32xf32>
    %17 = tpu.matmul %4, %16, %cst_19 {dimension_numbers = #tpu.dot_dimension_numbers<[1], [0], [0], [1], [0, 0, 1, 1], [], []>} : vector<16x32xbf16>, vector<32x32xbf16>, vector<16x32xf32> -> vector<16x32xf32>
    %18 = arith.addf %15, %17 : vector<16x32xf32>
    %c0_20 = arith.constant 0 : index
    %c0_21 = arith.constant 0 : index
    %19 = vector.load %arg15[%c0_20, %c0_21] : memref<16x32xf32, #tpu.memory_space<vmem>>, vector<16x32xf32>
    tpu.vector_store %arg15[%c0_20, %c0_21], %18 {strides = array<i32>} : memref<16x32xf32, #tpu.memory_space<vmem>>, vector<16x32xf32>,
    %c0_i32_22 = arith.constant 0 : i32
    %20 = arith.cmpi eq, %arg2, %c0_i32_22 : i32
    %21 = arith.extui %20 : i1 to i32
    %c0_i32_23 = arith.constant 0 : i32
    %22 = arith.cmpi ne, %21, %c0_i32_23 : i32
    scf.if %22 {
      %c0_24 = arith.constant 0 : index
      %c0_25 = arith.constant 0 : index
      %23 = vector.load %arg13[%c0_24, %c0_25] : memref<16x32xf32, #tpu.memory_space<vmem>>, vector<16x32xf32>
      %c0_26 = arith.constant 0 : index
      %c0_27 = arith.constant 0 : index
      %24 = vector.load %arg7[%c0_26, %c0_27] : memref<1x32xf32, #tpu.memory_space<vmem>>, vector<1x32xf32>
      %25 = vector.broadcast %24 : vector<1x32xf32> to vector<16x32xf32>
      %26 = arith.addf %23, %25 : vector<16x32xf32>
      %c0_28 = arith.constant 0 : index
      %c0_29 = arith.constant 0 : index
      %27 = vector.load %arg10[%c0_28, %c0_29] : memref<16x32xf32, #tpu.memory_space<vmem>>, vector<16x32xf32>
      tpu.vector_store %arg10[%c0_28, %c0_29], %26 {strides = array<i32>} : memref<16x32xf32, #tpu.memory_space<vmem>>, vector<16x32xf32>,
      %c0_30 = arith.constant 0 : index
      %c0_31 = arith.constant 0 : index
      %28 = vector.load %arg14[%c0_30, %c0_31] : memref<16x32xf32, #tpu.memory_space<vmem>>, vector<16x32xf32>
      %c0_32 = arith.constant 0 : index
      %c0_33 = arith.constant 0 : index
      %29 = vector.load %arg8[%c0_32, %c0_33] : memref<1x32xf32, #tpu.memory_space<vmem>>, vector<1x32xf32>
      %30 = vector.broadcast %29 : vector<1x32xf32> to vector<16x32xf32>
      %31 = arith.addf %28, %30 : vector<16x32xf32>
      %c0_34 = arith.constant 0 : index
      %c0_35 = arith.constant 0 : index
      %32 = vector.load %arg11[%c0_34, %c0_35] : memref<16x32xf32, #tpu.memory_space<vmem>>, vector<16x32xf32>
      tpu.vector_store %arg11[%c0_34, %c0_35], %31 {strides = array<i32>} : memref<16x32xf32, #tpu.memory_space<vmem>>, vector<16x32xf32>,
      %c0_36 = arith.constant 0 : index
      %c0_37 = arith.constant 0 : index
      %33 = vector.load %arg15[%c0_36, %c0_37] : memref<16x32xf32, #tpu.memory_space<vmem>>, vector<16x32xf32>
      %c0_38 = arith.constant 0 : index
      %c0_39 = arith.constant 0 : index
      %34 = vector.load %arg9[%c0_38, %c0_39] : memref<1x32xf32, #tpu.memory_space<vmem>>, vector<1x32xf32>
      %35 = vector.broadcast %34 : vector<1x32xf32> to vector<16x32xf32>
      %36 = arith.addf %33, %35 : vector<16x32xf32>
      %c0_40 = arith.constant 0 : index
      %c0_41 = arith.constant 0 : index
      %37 = vector.load %arg12[%c0_40, %c0_41] : memref<16x32xf32, #tpu.memory_space<vmem>>, vector<16x32xf32>
      tpu.vector_store %arg12[%c0_40, %c0_41], %36 {strides = array<i32>} : memref<16x32xf32, #tpu.memory_space<vmem>>, vector<16x32xf32>,
    } else {
    }
    return
  }
  func.func @transform_0(%arg0: i32, %arg1: i32, %arg2: i32) -> (i32, i32) {
    %c0_i32 = arith.constant 0 : i32
    return %arg0, %arg2 : i32, i32
  }
  func.func @transform_1(%arg0: i32, %arg1: i32, %arg2: i32) -> (i32, i32) {
    %c0_i32 = arith.constant 0 : i32
    return %arg2, %arg1 : i32, i32
  }
  func.func @transform_2(%arg0: i32, %arg1: i32, %arg2: i32) -> (i32, i32) {
    %c0_i32 = arith.constant 0 : i32
    return %arg2, %arg1 : i32, i32
  }
  func.func @transform_3(%arg0: i32, %arg1: i32, %arg2: i32) -> (i32, i32) {
    %c0_i32 = arith.constant 0 : i32
    return %arg2, %arg1 : i32, i32
  }
  func.func @transform_4(%arg0: i32, %arg1: i32, %arg2: i32) -> (i32, i32) {
    %c0_i32 = arith.constant 0 : i32
    %c0_i32_0 = arith.constant 0 : i32
    return %c0_i32, %arg1 : i32, i32
  }
  func.func @transform_5(%arg0: i32, %arg1: i32, %arg2: i32) -> (i32, i32) {
    %c0_i32 = arith.constant 0 : i32
    %c0_i32_0 = arith.constant 0 : i32
    return %c0_i32, %arg1 : i32, i32
  }
  func.func @transform_6(%arg0: i32, %arg1: i32, %arg2: i32) -> (i32, i32) {
    %c0_i32 = arith.constant 0 : i32
    %c0_i32_0 = arith.constant 0 : i32
    return %c0_i32, %arg1 : i32, i32
  }
  func.func @transform_7(%arg0: i32, %arg1: i32, %arg2: i32) -> (i32, i32) {
    %c0_i32 = arith.constant 0 : i32
    return %arg0, %arg1 : i32, i32
  }
  func.func @transform_8(%arg0: i32, %arg1: i32, %arg2: i32) -> (i32, i32) {
    %c0_i32 = arith.constant 0 : i32
    return %arg0, %arg1 : i32, i32
  }
  func.func @transform_9(%arg0: i32, %arg1: i32, %arg2: i32) -> (i32, i32) {
    %c0_i32 = arith.constant 0 : i32
    return %arg0, %arg1 : i32, i32
  }
}

</mosaic_0001>

<bundles_post_ra>
// kernel: tpu_custom_call.1
= control target key start
LH: loop header
LB: loop body
LE: loop exit
PB: predicated region body
PF: predicated region fallthrough
CT: control target
= control target key end

     0   :  { %15 = vsyncpa [#allocation6], 0  ;;  %s829_s0 = inlined_call_operand.hbm [shape: f32[16,32], index: 0, kind: input, shape index: {}]   ;;  %s830_s1 = inlined_call_operand.hbm [shape: bf16[32,32], index: 1, kind: input, shape index: {}]   ;;  %s831_s2 = inlined_call_operand.hbm [shape: bf16[32,32], index: 2, kind: input, shape index: {}]   ;;  %s832_s3 = inlined_call_operand.hbm [shape: bf16[32,32], index: 3, kind: input, shape index: {}]   ;;  %s833_s4 = inlined_call_operand.vmem [shape: f32[1,32], index: 4, kind: input, shape index: {}]   ;;  %s834_s5 = inlined_call_operand.vmem [shape: f32[1,32], index: 5, kind: input, shape index: {}]   ;;  %s835_s6 = inlined_call_operand.vmem [shape: f32[1,32], index: 6, kind: input, shape index: {}]   ;;  %s836_s7 = inlined_call_operand.hbm [shape: f32[16,32], index: 7, kind: output, shape index: {0}]   ;;  %s837_s8 = inlined_call_operand.hbm [shape: f32[16,32], index: 8, kind: output, shape index: {1}]   ;;  %s838_s9 = inlined_call_operand.hbm [shape: f32[16,32], index: 9, kind: output, shape index: {2}]  }
   0x1   :  { %16 = vsyncpa [#allocation9], 0 }
   0x2   :  { %17 = vsyncpa [#allocation12], 0 }
   0x3   :  { %18 = vsyncpa [#allocation7], 0 }
   0x4   :  { %19 = vsyncpa [#allocation15], 0  ;;  %s614_s30 = smov [#allocation8]   ;;  %s450_s13 = scalar_lea.hbm %s830_s1, 256 }
   0x5   :  { %s37_s10 = sshll.u32 %s614_s30, 4  ;;  %p451_p0 = scmp.ne.s32.totalorder %s830_s1, %s450_s13  ;;  %s38_s10 = int_to_ptr.vmem [resolvable:$true] %s37_s10 }
   0x6   :  { %p454_p1 = scmp.lt.u32.totalorder %s450_s13, %s830_s1 }
   0x8   :  { %p456_p2 = pnand %p454_p1, %p451_p0 }
   0xa   :  { %459 = shalt.err (!%p456_p2)
}
   0xb   :  { %s460_s18 = scalar_lea.vmem %s38_s10, 256  ;;  %p465_p4 = scmp.lt.s32.totalorder %s38_s10, %s38_s10 }
   0xc   :  { %p461_p3 = scmp.ne.s32.totalorder %s38_s10, %s460_s18  ;;  %p466_p5 = scmp.lt.s32.totalorder %s460_s18, %s460_s18 }
   0xe   :  { %p467_p6 = por %p466_p5, %p465_p4 }
  0x10   :  { %p468_p7 = pnand %p467_p6, %p461_p3 }
  0x12   :  { %471 = shalt.err (!%p468_p7)
}
  0x13   :  { %s615_s19 = smov 64   ;;  %s616_s20 = smov 4  }
  0x14   :  { %43 = dma.hbm_to_vmem [thread:$0]  %s830_s1, 256, %s38_s10, [#allocation9], %s615_s19, %s615_s19, %s616_s20  }
  0x15   :  { %s617_s23 = smov [#allocation5]   ;;  %s472_s27 = scalar_lea.hbm %s829_s0, 256 }
  0x16   :  { %s25_s24 = sshll.u32 %s617_s23, 4  ;;  %p473_p8 = scmp.ne.s32.totalorder %s829_s0, %s472_s27  ;;  %s26_s24 = int_to_ptr.vmem [resolvable:$true] %s25_s24 }
  0x17   :  { %p476_p9 = scmp.lt.u32.totalorder %s472_s27, %s829_s0 }
  0x19   :  { %p478_p10 = pnand %p476_p9, %p473_p8 }
  0x1b   :  { %481 = shalt.err (!%p478_p10)
}
  0x1c   :  { %s482_s12 = scalar_lea.vmem %s26_s24, 256  ;;  %p487_p12 = scmp.lt.s32.totalorder %s26_s24, %s26_s24 }
  0x1d   :  { %p483_p11 = scmp.ne.s32.totalorder %s26_s24, %s482_s12  ;;  %p488_p13 = scmp.lt.s32.totalorder %s482_s12, %s482_s12 }
  0x1f   :  { %p489_p0 = por %p488_p13, %p487_p12 }
  0x21   :  { %p490_p1 = pnand %p489_p0, %p483_p11 }
  0x23   :  { %493 = shalt.err (!%p490_p1)
}
  0x24   :  { %s618_s1 = smov 128   ;;  %s619_s10 = smov 8  }
  0x25   :  { %31 = dma.hbm_to_vmem [thread:$0]  %s829_s0, 256, %s26_s24, [#allocation6], %s618_s1, %s618_s1, %s619_s10  }
  0x26   :  { %s620_s15 = smov [#allocation10]   ;;  %s621_s17 = smov [#allocation11]  }
  0x27   :  { %s49_s16 = sshll.u32 %s620_s15, 4  ;;  %s61_s18 = sshll.u32 %s621_s17, 4  ;;  %s50_s16 = int_to_ptr.vmem [resolvable:$true] %s49_s16  ;;  %s707_s18 = int_to_ptr.vmem [resolvable:$true] %s61_s18 }
  0x28   :  { %s494_s23 = scalar_lea.hbm %s831_s2, 256 }
  0x29   :  { %p495_p2 = scmp.ne.s32.totalorder %s831_s2, %s494_s23  ;;  %p498_p3 = scmp.lt.u32.totalorder %s494_s23, %s831_s2 }
  0x2b   :  { %p500_p4 = pnand %p498_p3, %p495_p2 }
  0x2d   :  { %503 = shalt.err (!%p500_p4)
}
  0x2e   :  { %s504_s0 = scalar_lea.vmem %s50_s16, 256  ;;  %p509_p6 = scmp.lt.s32.totalorder %s50_s16, %s50_s16 }
  0x2f   :  { %p505_p5 = scmp.ne.s32.totalorder %s50_s16, %s504_s0  ;;  %p510_p7 = scmp.lt.s32.totalorder %s504_s0, %s504_s0 }
  0x31   :  { %p511_p8 = por %p510_p7, %p509_p6 }
  0x33   :  { %p512_p9 = pnand %p511_p8, %p505_p5 }
  0x35   :  { %515 = shalt.err (!%p512_p9)
}
  0x36   :  { %55 = dma.hbm_to_vmem [thread:$0]  %s831_s2, 256, %s50_s16, [#allocation9], %s615_s19, %s615_s19, %s616_s20  }
  0x37   :  { %s516_s12 = scalar_lea.hbm %s832_s3, 256 }
  0x38   :  { %p517_p10 = scmp.ne.s32.totalorder %s832_s3, %s516_s12  ;;  %p520_p11 = scmp.lt.u32.totalorder %s516_s12, %s832_s3 }
  0x3a   :  { %p522_p12 = pnand %p520_p11, %p517_p10 }
  0x3c   :  { %525 = shalt.err (!%p522_p12)
}
  0x3d   :  { %s526_s21 = scalar_lea.vmem %s707_s18, 256  ;;  %p531_p0 = scmp.lt.s32.totalorder %s707_s18, %s707_s18 }
  0x3e   :  { %p527_p13 = scmp.ne.s32.totalorder %s707_s18, %s526_s21  ;;  %p532_p1 = scmp.lt.s32.totalorder %s526_s21, %s526_s21 }
  0x40   :  { %p533_p2 = por %p532_p1, %p531_p0 }
  0x42   :  { %p534_p3 = pnand %p533_p2, %p527_p13 }
  0x44   :  { %537 = shalt.err (!%p534_p3)
}
  0x45   :  { %67 = dma.hbm_to_vmem [thread:$0]  %s832_s3, 256, %s707_s18, [#allocation12], %s615_s19, %s615_s19, %s616_s20  }
  0x46   :  { %604 = dma.done.wait [#allocation6], 256  }
  0x47   :  { %605 = vsyncadd [#allocation6], 4294967040 }
  0x48   :  { %606 = dma.done.wait [#allocation9], 512  }
  0x49   :  { %607 = vsyncadd [#allocation9], 4294966784 }
  0x4a   :  { %608 = dma.done.wait [#allocation12], 256  }
  0x4b   :  { %609 = vsyncadd [#allocation12], 4294967040  ;;  %vm91_vm0 = vcmask 261120   ;;  %v622_v0 = vmov 0.0   ;;  %vm623_vm1 = vmmov 0   ;;  %v444_v1 = vld [vmem:[#allocation8] sm:$0xff]  }
  0x4c   :  { %407 = vmatprep.subr.bf16.mxu0 %v622_v0  ;;  %415 = vmatprep.subr.bf16.mxu1 %v622_v0  ;;  %92 = vst.msk [vmem:[#allocation2] sm:$0xff] %vm91_vm0, %v622_v0  ;;  %93 = vst.msk [vmem:[#allocation2 + $0x8] sm:$0xff] %vm91_vm0, %v622_v0  ;;  %v445_v2 = vld [vmem:[#allocation8 + $0x8] sm:$0xff]   ;;  %v446_v3 = vld [vmem:[#allocation10] sm:$0xff]   ;;  %s624_s22 = smov [#allocation13]   ;;  %s625_s25 = smov [#allocation14]  }
  0x4d   :  { %94 = vst.msk [vmem:[#allocation3] sm:$0xff] %vm91_vm0, %v622_v0  ;;  %95 = vst.msk [vmem:[#allocation3 + $0x8] sm:$0xff] %vm91_vm0, %v622_v0  ;;  %411 = vmatprep.mubr.msk.bf16.mxu0 %vm623_vm1, %v622_v0  ;;  %419 = vmatprep.mubr.msk.bf16.mxu1 %vm623_vm1, %v622_v0  ;;  %v98_v4 = vld [vmem:[#allocation5] sm:$0xff]  ;;  %v99_v5 = vld [vmem:[#allocation5 + $0x8] sm:$0xff]  ;;  %s341_s23 = sshll.u32 %s624_s22, 4  ;;  %s353_s26 = sshll.u32 %s625_s25, 4  ;;  %s342_s23 = int_to_ptr.vmem [resolvable:$true] %s341_s23  ;;  %s770_s26 = int_to_ptr.vmem [resolvable:$true] %s353_s26 }
  0x4e   :  { %96 = vst.msk [vmem:[#allocation4] sm:$0xff] %vm91_vm0, %v622_v0  ;;  %97 = vst.msk [vmem:[#allocation4 + $0x8] sm:$0xff] %vm91_vm0, %v622_v0  ;;  %408 = vmatpush3.bf16.msra.mxu0 %v444_v1  ;;  %416 = vmatpush3.bf16.msra.mxu1 %v446_v3  ;;  %v100_v6 = vpack.c.bf16 %v99_v5, %v98_v4  ;;  %v448_v7 = vld [vmem:[#allocation10 + $0x8] sm:$0xff]   ;;  %v447_v8 = vld [vmem:[#allocation11] sm:$0xff]   ;;  %s538_s27 = scalar_lea.vmem %s342_s23, 256  ;;  %p543_p5 = scmp.lt.s32.totalorder %s342_s23, %s342_s23 }
  0x4f   :  { %409 = vmatprep.subr.bf16.mxu0 %v622_v0  ;;  %417 = vmatprep.subr.bf16.mxu1 %v622_v0  ;;  %v449_v9 = vld [vmem:[#allocation11 + $0x8] sm:$0xff]   ;;  %v395_v29 = vld [vmem:[%s833_s4] ss:$0 sm:$0xff]  ;;  %p539_p4 = scmp.ne.s32.totalorder %s342_s23, %s538_s27  ;;  %p544_p6 = scmp.lt.s32.totalorder %s538_s27, %s538_s27 }
  0x50   :  { %v396_v33 = vld [vmem:[%s834_s5] ss:$0 sm:$0xff] }
  0x51   :  { %v397_v44 = vld [vmem:[%s835_s6] ss:$0 sm:$0xff]  ;;  %p545_p7 = por %p544_p6, %p543_p5 }
  0x52   :  { %410 = vmatpush3.bf16.msra.mxu0 %v445_v2  ;;  %418 = vmatpush3.bf16.msra.mxu1 %v448_v7 }
  0x53   :  { %423 = vmatprep.subr.bf16.mxu0 %v622_v0  ;;  %v101_v10 = vld [vmem:[#allocation2] sm:$0xff]  ;;  %v102_v12 = vld [vmem:[#allocation2 + $0x8] sm:$0xff]  ;;  %p546_p8 = pnand %p545_p7, %p539_p4 }
  0x54   :  { %v168_v13 = vld [vmem:[#allocation3] sm:$0xff]  ;;  %v169_v18 = vld [vmem:[#allocation3 + $0x8] sm:$0xff] }
  0x55   :  { %412 = vmatmul.mubr.msk.bf16.vlgmr.msra.gmra.mrb[0].mxu0 %vm91_vm0, %v100_v6  ;;  %420 = vmatmul.mubr.msk.bf16.vlgmr.msra.gmra.mrb[0].mxu1 %vm91_vm0, %v100_v6  ;;  %v231_v26 = vld [vmem:[#allocation4] sm:$0xff]  ;;  %v232_v28 = vld [vmem:[#allocation4 + $0x8] sm:$0xff] }
  0x56   :  { %424 = vmatpush3.bf16.msra.mxu0 %v447_v8  ;;  %427 = vmatprep.mubr.msk.bf16.mxu0 %vm623_vm1, %v622_v0 }
  0x57   :  { %425 = vmatprep.subr.bf16.mxu0 %v622_v0 }
  0x5a   :  { %426 = vmatpush3.bf16.msra.mxu0 %v449_v9 }
  0x5d   :  { %428 = vmatmul.mubr.msk.bf16.vlgmr.msra.gmra.mrb[4].mxu0 %vm91_vm0, %v100_v6 }
 0x128   :  { %v157_v11 = vpop.f32.mrb[0].mxu0  ;;  %v220_v17 = vpop.f32.mrb[0].mxu1 }
 0x129   :  { %v164_v14 = vadd.f32 %v157_v11, %v101_v10  ;;  %v413_v15 = vpop.f32.mrb[1].mxu0  ;;  %v227_v21 = vadd.f32 %v220_v17, %v168_v13  ;;  %v421_v22 = vpop.f32.mrb[1].mxu1 }
 0x12a   :  { %v160_v16 = vpop.f32.mrb[2].mxu0  ;;  %v223_v23 = vpop.f32.mrb[2].mxu1 }
 0x12b   :  { %166 = vst.msk [vmem:[#allocation2] sm:$0xff] %vm91_vm0, %v164_v14  ;;  %v165_v19 = vadd.f32 %v160_v16, %v102_v12  ;;  %v414_v20 = vpop.f32.mrb[3].mxu0  ;;  %229 = vst.msk [vmem:[#allocation3] sm:$0xff] %vm91_vm0, %v227_v21  ;;  %v228_v24 = vadd.f32 %v223_v23, %v169_v18  ;;  %v422_v25 = vpop.f32.mrb[3].mxu1 }
 0x12d   :  { %167 = vst.msk [vmem:[#allocation2 + $0x8] sm:$0xff] %vm91_vm0, %v165_v19  ;;  %230 = vst.msk [vmem:[#allocation3 + $0x8] sm:$0xff] %vm91_vm0, %v228_v24 }
 0x130   :  { %v283_v27 = vpop.f32.mrb[4].mxu0 }
 0x131   :  { %v290_v30 = vadd.f32 %v283_v27, %v231_v26  ;;  %v429_v31 = vpop.f32.mrb[5].mxu0 }
 0x132   :  { %v286_v32 = vpop.f32.mrb[6].mxu0  ;;  %v297_v34 = vld [vmem:[#allocation2] sm:$0xff]  ;;  %v310_v38 = vld [vmem:[#allocation3] sm:$0xff] }
 0x133   :  { %292 = vst.msk [vmem:[#allocation4] sm:$0xff] %vm91_vm0, %v290_v30  ;;  %v291_v35 = vadd.f32 %v286_v32, %v232_v28  ;;  %v430_v36 = vpop.f32.mrb[7].mxu0  ;;  %v306_v37 = vadd.f32 %v395_v29, %v297_v34  ;;  %v319_v40 = vadd.f32 %v396_v33, %v310_v38 }
 0x134   :  { %v298_v39 = vld [vmem:[#allocation2 + $0x8] sm:$0xff]  ;;  %v311_v42 = vld [vmem:[#allocation3 + $0x8] sm:$0xff] }
 0x135   :  { %293 = vst.msk [vmem:[#allocation4 + $0x8] sm:$0xff] %vm91_vm0, %v291_v35  ;;  %v307_v41 = vadd.f32 %v395_v29, %v298_v39  ;;  %308 = vst.msk [vmem:[#allocation13] sm:$0xff] %vm91_vm0, %v306_v37  ;;  %v320_v43 = vadd.f32 %v396_v33, %v311_v42 }
 0x136   :  { %321 = vst.msk [vmem:[#allocation14] sm:$0xff] %vm91_vm0, %v319_v40 }
 0x137   :  { %309 = vst.msk [vmem:[#allocation13 + $0x8] sm:$0xff] %vm91_vm0, %v307_v41 }
 0x138   :  { %549 = shalt.err (!%p546_p8)
}
 0x139   :  { %s550_s24 = scalar_lea.hbm %s836_s7, 256 }
 0x13a   :  { %p551_p9 = scmp.ne.s32.totalorder %s836_s7, %s550_s24  ;;  %p554_p10 = scmp.lt.u32.totalorder %s550_s24, %s836_s7 }
 0x13c   :  { %p556_p11 = pnand %p554_p10, %p551_p9 }
 0x13e   :  { %559 = shalt.err (!%p556_p11)
}
 0x13f   :  { %347 = dma.vmem_to_hbm [thread:$0]  %s342_s23, 256, %s836_s7, [#allocation7], %s618_s1, %s618_s1, %s619_s10   ;;  %322 = vst.msk [vmem:[#allocation14 + $0x8] sm:$0xff] %vm91_vm0, %v320_v43 }
 0x140   :  { %s626_s14 = smov [#allocation16]   ;;  %s560_s17 = scalar_lea.vmem %s770_s26, 256 }
 0x141   :  { %s365_s15 = sshll.u32 %s626_s14, 4  ;;  %p561_p12 = scmp.ne.s32.totalorder %s770_s26, %s560_s17  ;;  %s366_s15 = int_to_ptr.vmem [resolvable:$true] %s365_s15 }
 0x142   :  { %p565_p13 = scmp.lt.s32.totalorder %s770_s26, %s770_s26  ;;  %p566_p0 = scmp.lt.s32.totalorder %s560_s17, %s560_s17 }
 0x144   :  { %p567_p1 = por %p566_p0, %p565_p13 }
 0x146   :  { %p568_p2 = pnand %p567_p1, %p561_p12 }
 0x148   :  { %571 = shalt.err (!%p568_p2)
}
 0x149   :  { %s572_s16 = scalar_lea.hbm %s837_s8, 256 }
 0x14a   :  { %p573_p3 = scmp.ne.s32.totalorder %s837_s8, %s572_s16  ;;  %p576_p4 = scmp.lt.u32.totalorder %s572_s16, %s837_s8 }
 0x14c   :  { %p578_p5 = pnand %p576_p4, %p573_p3 }
 0x14e   :  { %581 = shalt.err (!%p578_p5)
}
 0x14f   :  { %359 = dma.vmem_to_hbm [thread:$0]  %s770_s26, 256, %s837_s8, [#allocation15], %s618_s1, %s618_s1, %s619_s10   ;;  %v323_v45 = vld [vmem:[#allocation4] sm:$0xff]  ;;  %v324_v47 = vld [vmem:[#allocation4 + $0x8] sm:$0xff] }
 0x150   :  { %v332_v46 = vadd.f32 %v397_v44, %v323_v45  ;;  %v333_v48 = vadd.f32 %v397_v44, %v324_v47  ;;  %s582_s23 = scalar_lea.vmem %s366_s15, 256  ;;  %p587_p7 = scmp.lt.s32.totalorder %s366_s15, %s366_s15 }
 0x151   :  { %p583_p6 = scmp.ne.s32.totalorder %s366_s15, %s582_s23  ;;  %p588_p8 = scmp.lt.s32.totalorder %s582_s23, %s582_s23 }
 0x152   :  { %334 = vst.msk [vmem:[#allocation16] sm:$0xff] %vm91_vm0, %v332_v46  ;;  %335 = vst.msk [vmem:[#allocation16 + $0x8] sm:$0xff] %vm91_vm0, %v333_v48 }
 0x153   :  { %p589_p9 = por %p588_p8, %p587_p7 }
 0x155   :  { %p590_p10 = pnand %p589_p9, %p583_p6 }
 0x157   :  { %593 = shalt.err (!%p590_p10)
}
 0x158   :  { %s594_s8 = scalar_lea.hbm %s838_s9, 256 }
 0x159   :  { %p595_p11 = scmp.ne.s32.totalorder %s838_s9, %s594_s8  ;;  %p598_p12 = scmp.lt.u32.totalorder %s594_s8, %s838_s9 }
 0x15b   :  { %p600_p13 = pnand %p598_p12, %p595_p11 }
 0x15d   :  { %603 = shalt.err (!%p600_p13)
}
 0x15e   :  { %371 = dma.vmem_to_hbm [thread:$0]  %s366_s15, 256, %s838_s9, [#allocation15], %s618_s1, %s618_s1, %s619_s10  }
 0x15f   :  { %610 = dma.done.wait [#allocation7], 256  }
 0x160   :  { %611 = vsyncadd [#allocation7], 4294967040 }
 0x161   :  { %612 = dma.done.wait [#allocation15], 512  }
 0x162   :  { %613 = vsyncadd [#allocation15], 4294966784 }
 0x163   :  { %381 = vsyncpa [#allocation6], 1 }
 0x164   :  { %382 = vsyncpa [#allocation9], 1 }
 0x165   :  { %383 = vsyncpa [#allocation12], 1 }
 0x166   :  { %384 = vsyncpa [#allocation7], 1 }
 0x167   :  { %385 = vsyncpa [#allocation15], 1 }

</bundles_post_ra>
